<compile_context>
chip_gen: v7x
topology: tpu7x:2x2x1
jax: 0.10.0
libtpu: 0.0.40
codegen_flags: <defaults>
</compile_context>

<pallas_src>
import functools
import numpy as np
import jax
import jax.numpy as jnp
from jax.experimental import pallas as pl
from jax.experimental.pallas import tpu as pltpu


def softplus_inverse(x):
    return x + np.log(-np.expm1(-x))


def _softplus_np(x):
    return np.log1p(np.exp(-np.abs(x))) + np.maximum(x, 0.0)


def make_rbf_params(K=64, cutoff=10.0, dtype=np.float32):
    """Deterministic parameter init exactly mirroring RBFLayer.__init__."""
    centers_raw = softplus_inverse(np.linspace(1.0, np.exp(-cutoff), K))
    centers = _softplus_np(centers_raw).astype(dtype)                  # (K,)
    widths_raw = np.array(
        [softplus_inverse(0.5 / (1.0 - np.exp(-cutoff) / K) ** 2)] * K)
    widths = _softplus_np(widths_raw).astype(dtype)                    # (K,)
    return jnp.asarray(centers), jnp.asarray(widths)


def _rbf_kernel(d_ref, c_ref, w_ref, o_ref, *, cutoff, K, P, bf16_compute):
    # d_ref: (tm, P) f32, c_ref/w_ref: (1, P*K) f32 (pre-tiled),
    # o_ref: (tm, P*K) in out_dtype.
    tm = d_ref.shape[0]
    inv_cutoff = 1.0 / cutoff

    d = d_ref[...]                                            # (tm, P)
    # Broadcast each packed distance column into its K-lane segment ONCE,
    # then run all heavy math lane-dense on the full (tm, P*K) tile.
    if P == 1:
        d_wide = jnp.broadcast_to(d, (tm, K))
    else:
        d_wide = jnp.concatenate(
            [jnp.broadcast_to(d[:, p:p + 1], (tm, K)) for p in range(P)],
            axis=-1)                                          # (tm, P*K)

    # cutoff_fn in Horner form; max(poly, 0) == where(x < 1, poly, 0) because
    # D >= 0 (distances) and the quintic is monotone decreasing with p(1)=0.
    x = d_wide * inv_cutoff
    poly = 1.0 - x * x * x * (10.0 - x * (15.0 - 6.0 * x))
    cut = jnp.maximum(poly, 0.0)                              # (tm, P*K)

    if bf16_compute:
        # v6e/v7x knob: bf16 broadcast section (diff / square / gaussian exp),
        # polynomial kept in f32.  Not recommended on v5e.
        dw = d_wide.astype(jnp.bfloat16)
        c = c_ref[...].astype(jnp.bfloat16)
        w = w_ref[...].astype(jnp.bfloat16)
        diff = jnp.exp(-dw) - c
        out = cut.astype(jnp.bfloat16) * jnp.exp(-(w * diff) * diff)
    else:
        c = c_ref[...]                                        # (1, P*K)
        w = w_ref[...]                                        # (1, P*K)
        diff = jnp.exp(-d_wide) - c
        out = cut * jnp.exp(-(w * diff) * diff)

    # Single lane-dense (tm, P*K) store; cast only here (bf16 store option).
    o_ref[...] = out.astype(o_ref.dtype)


def _round_up(x, m):
    return ((x + m - 1) // m) * m


def _choose_tm(rows, max_tm):
    """Largest row tile (multiple of 8, <= max_tm) keeping >= 2 grid steps."""
    if rows <= 16:
        return 8
    half = _round_up((rows + 1) // 2, 8)
    return int(min(max_tm, half))


def rbf_layer(D, centers, widths, cutoff=10.0, *, max_tm=8192,
              out_dtype=None, compute_dtype=jnp.float32):
    """Forward pass of RBFLayer. Returns array of shape D.shape + (K,)."""
    K = int(centers.shape[0])
    orig_shape = D.shape
    if out_dtype is None:
        out_dtype = jnp.float32                 # matches torch.float module
    bf16_compute = jnp.dtype(compute_dtype) == jnp.dtype(jnp.bfloat16)

    d_flat = D.reshape(-1).astype(jnp.float32)
    M = int(d_flat.shape[0])

    # Pack P distance rows per 128-lane output row when K divides 128 so the
    # output last dim is P*K = 128 (full-width, unmasked vector stores).
    P = 128 // K if (K <= 128 and 128 % K == 0) else 1

    packed_rows = -(-M // P)
    rows = _round_up(packed_rows, 8)            # pad only to sublane multiple
    Mpad = rows * P
    if Mpad != M:
        d_flat = jnp.pad(d_flat, (0, Mpad - M))     # padded d=0 is harmless
    d2 = d_flat.reshape(rows, P)
    # Pre-tile params so each packed column sees them in its own lane segment.
    c2 = jnp.tile(centers.astype(jnp.float32), P).reshape(1, P * K)
    w2 = jnp.tile(widths.astype(jnp.float32), P).reshape(1, P * K)

    tm = _choose_tm(rows, max_tm)
    grid = (pl.cdiv(rows, tm),)                 # last block may overhang; OOB
                                                # rows are masked on store.

    out = pl.pallas_call(
        functools.partial(_rbf_kernel, cutoff=float(cutoff), K=K, P=P,
                          bf16_compute=bf16_compute),
        out_shape=jax.ShapeDtypeStruct((rows, P * K), out_dtype),
        grid=grid,
        in_specs=[
            pl.BlockSpec((tm, P), lambda i: (i, 0)),
            pl.BlockSpec((1, P * K), lambda i: (0, 0)),
            pl.BlockSpec((1, P * K), lambda i: (0, 0)),
        ],
        out_specs=pl.BlockSpec((tm, P * K), lambda i: (i, 0)),
        compiler_params=pltpu.CompilerParams(
            dimension_semantics=("parallel",)),
    )(d2, c2, w2)

    # Row-major (rows, P*K) == (Mpad, K); slice only if we actually padded
    # (at most 8*P-1 extra elements now).
    out = out.reshape(Mpad, K)
    if Mpad != M:
        out = out[:M]
    return out.reshape(orig_shape + (K,))


def _rbf_reference(D, centers, widths, cutoff):
    # Pure-JAX reference with the original (torch) op ordering.
    d = D[..., None].astype(jnp.float32)
    x = d * (1.0 / cutoff)
    x3 = x * x * x
    x4 = x3 * x
    x5 = x4 * x
    cut = jnp.where(x < 1.0, 1.0 - 6.0 * x5 + 15.0 * x4 - 10.0 * x3,
                    jnp.zeros_like(x))
    diff = jnp.exp(-d) - centers
    return cut * jnp.exp(-(widths * diff) * diff)


if __name__ == "__main__":
    K = 64
    cutoff = 10.0
    centers, widths = make_rbf_params(K=K, cutoff=cutoff)

    # D: pairwise-distance style input (batch=2, n_nodes=16, n_nodes=16)
    key = jax.random.PRNGKey(0)
    D = jax.random.uniform(key, (2, 16, 16), dtype=jnp.float32,
                           minval=0.0, maxval=12.0)

    ref = _rbf_reference(D, centers, widths, cutoff)

    # Default path: f32 compute, f32 output (faithful to the torch module).
    out = jax.block_until_ready(rbf_layer(D, centers, widths, cutoff=cutoff))
    assert out.shape == D.shape + (K,), out.shape
    np.testing.assert_allclose(np.asarray(out), np.asarray(ref),
                               rtol=1e-4, atol=2e-5)

    # bf16-store path: f32 math, bf16 HBM writeback (halves dominant traffic).
    out_bf16 = jax.block_until_ready(
        rbf_layer(D, centers, widths, cutoff=cutoff, out_dtype=jnp.bfloat16))
    np.testing.assert_allclose(np.asarray(out_bf16.astype(jnp.float32)),
                               np.asarray(ref), rtol=1e-2, atol=1e-2)

    print("KERNEL_OK")
</pallas_src>

<mosaic_0001>
module attributes {stable_mosaic.version = 11 : i64} {
  func.func @_rbf_kernel(%arg0: i32, %arg1: memref<128x2xf32, #tpu.memory_space<vmem>>, %arg2: memref<1x128xf32, #tpu.memory_space<vmem>>, %arg3: memref<1x128xf32, #tpu.memory_space<vmem>>, %arg4: memref<128x128xf32, #tpu.memory_space<vmem>>) attributes {dimension_semantics = [#tpu.dimension_semantics<parallel>], iteration_bounds = array<i64: 2>, scalar_prefetch = 0 : i64, scratch_operands = 0 : i64, tpu.core_type = #tpu.core_type<tc>, window_params = [{transform_indices = @transform_0, window_bounds = array<i64: 128, 2>}, {pipeline_mode = #tpu.pipeline_mode<synchronous>, transform_indices = @transform_1, window_bounds = array<i64: 1, 128>}, {pipeline_mode = #tpu.pipeline_mode<synchronous>, transform_indices = @transform_2, window_bounds = array<i64: 1, 128>}, {transform_indices = @transform_3, window_bounds = array<i64: 128, 128>}]} {
    %c0 = arith.constant 0 : index
    %c0_0 = arith.constant 0 : index
    %0 = vector.load %arg1[%c0, %c0_0] : memref<128x2xf32, #tpu.memory_space<vmem>>, vector<128x2xf32>
    %1 = vector.extract_strided_slice %0 {offsets = [0, 0], sizes = [128, 1], strides = [1, 1]} : vector<128x2xf32> to vector<128x1xf32>
    %2 = vector.shape_cast %1 : vector<128x1xf32> to vector<128x1xf32>
    %3 = vector.broadcast %2 : vector<128x1xf32> to vector<128x64xf32>
    %4 = vector.extract_strided_slice %0 {offsets = [0, 1], sizes = [128, 1], strides = [1, 1]} : vector<128x2xf32> to vector<128x1xf32>
    %5 = vector.shape_cast %4 : vector<128x1xf32> to vector<128x1xf32>
    %6 = vector.broadcast %5 : vector<128x1xf32> to vector<128x64xf32>
    %7 = tpu.concatenate %3, %6 in 1 : vector<128x64xf32>, vector<128x64xf32> -> vector<128x128xf32>
    %cst = arith.constant 1.000000e-01 : f32
    %8 = vector.broadcast %cst : f32 to vector<128x128xf32>
    %9 = arith.mulf %7, %8 : vector<128x128xf32>
    %10 = arith.mulf %9, %9 : vector<128x128xf32>
    %11 = arith.mulf %10, %9 : vector<128x128xf32>
    %cst_1 = arith.constant 6.000000e+00 : f32
    %12 = vector.broadcast %cst_1 : f32 to vector<128x128xf32>
    %13 = arith.mulf %12, %9 : vector<128x128xf32>
    %cst_2 = arith.constant 1.500000e+01 : f32
    %14 = vector.broadcast %cst_2 : f32 to vector<128x128xf32>
    %15 = arith.subf %14, %13 : vector<128x128xf32>
    %16 = arith.mulf %9, %15 : vector<128x128xf32>
    %cst_3 = arith.constant 1.000000e+01 : f32
    %17 = vector.broadcast %cst_3 : f32 to vector<128x128xf32>
    %18 = arith.subf %17, %16 : vector<128x128xf32>
    %19 = arith.mulf %11, %18 : vector<128x128xf32>
    %cst_4 = arith.constant 1.000000e+00 : f32
    %20 = vector.broadcast %cst_4 : f32 to vector<128x128xf32>
    %21 = arith.subf %20, %19 : vector<128x128xf32>
    %cst_5 = arith.constant 0.000000e+00 : f32
    %22 = vector.broadcast %cst_5 : f32 to vector<128x128xf32>
    %23 = arith.maximumf %21, %22 : vector<128x128xf32>
    %c0_6 = arith.constant 0 : index
    %c0_7 = arith.constant 0 : index
    %24 = vector.load %arg2[%c0_6, %c0_7] : memref<1x128xf32, #tpu.memory_space<vmem>>, vector<1x128xf32>
    %c0_8 = arith.constant 0 : index
    %c0_9 = arith.constant 0 : index
    %25 = vector.load %arg3[%c0_8, %c0_9] : memref<1x128xf32, #tpu.memory_space<vmem>>, vector<1x128xf32>
    %cst_10 = arith.constant 0.000000e+00 : f32
    %26 = vector.broadcast %cst_10 : f32 to vector<128x128xf32>
    %27 = arith.subf %26, %7 : vector<128x128xf32>
    %28 = math.exp %27 : vector<128x128xf32>
    %29 = vector.broadcast %24 : vector<1x128xf32> to vector<128x128xf32>
    %30 = arith.subf %28, %29 : vector<128x128xf32>
    %31 = vector.broadcast %25 : vector<1x128xf32> to vector<128x128xf32>
    %32 = arith.mulf %31, %30 : vector<128x128xf32>
    %cst_11 = arith.constant 0.000000e+00 : f32
    %33 = vector.broadcast %cst_11 : f32 to vector<128x128xf32>
    %34 = arith.subf %33, %32 : vector<128x128xf32>
    %35 = arith.mulf %34, %30 : vector<128x128xf32>
    %36 = math.exp %35 : vector<128x128xf32>
    %37 = arith.mulf %23, %36 : vector<128x128xf32>
    %c0_12 = arith.constant 0 : index
    %c0_13 = arith.constant 0 : index
    %38 = vector.load %arg4[%c0_12, %c0_13] : memref<128x128xf32, #tpu.memory_space<vmem>>, vector<128x128xf32>
    tpu.vector_store %arg4[%c0_12, %c0_13], %37 {strides = array<i32>} : memref<128x128xf32, #tpu.memory_space<vmem>>, vector<128x128xf32>,
    return
  }
  func.func @transform_0(%arg0: i32) -> (i32, i32) {
    %c0_i32 = arith.constant 0 : i32
    %c0_i32_0 = arith.constant 0 : i32
    return %arg0, %c0_i32 : i32, i32
  }
  func.func @transform_1(%arg0: i32) -> (i32, i32) {
    %c0_i32 = arith.constant 0 : i32
    %c0_i32_0 = arith.constant 0 : i32
    %c0_i32_1 = arith.constant 0 : i32
    return %c0_i32, %c0_i32_0 : i32, i32
  }
  func.func @transform_2(%arg0: i32) -> (i32, i32) {
    %c0_i32 = arith.constant 0 : i32
    %c0_i32_0 = arith.constant 0 : i32
    %c0_i32_1 = arith.constant 0 : i32
    return %c0_i32, %c0_i32_0 : i32, i32
  }
  func.func @transform_3(%arg0: i32) -> (i32, i32) {
    %c0_i32 = arith.constant 0 : i32
    %c0_i32_0 = arith.constant 0 : i32
    return %arg0, %c0_i32 : i32, i32
  }
}

</mosaic_0001>

<bundles_post_ra>
// kernel: tpu_custom_call.1
= control target key start
LH: loop header
LB: loop body
LE: loop exit
PB: predicated region body
PF: predicated region fallthrough
CT: control target
= control target key end

     0   :  { %8 = vsyncpa [#allocation3], 0  ;;  %s1280_s0 = inlined_call_operand.vmem [shape: f32[256,2], index: 0, kind: input, shape index: {}]   ;;  %s1281_s1 = inlined_call_operand.vmem [shape: f32[1,128], index: 1, kind: input, shape index: {}]   ;;  %s1282_s2 = inlined_call_operand.vmem [shape: f32[1,128], index: 2, kind: input, shape index: {}]   ;;  %s1283_s3 = inlined_call_operand.hbm [shape: f32[256,128], index: 3, kind: output, shape index: {}]  }
   0x1   :  { %10 = vsyncpa [#allocation3 + $0x1], 0  ;;  %s990_s12 = smov 0   ;;  %s992_s13 = smov 0  }
   0x2   :  { %s994_s14 = smov 0   ;;  %s996_s15 = smov 0  }
   0x3 LB: > { %s1011_s16 = sadd.s32 4294967295, %s963_s15   ;;  %s775_s17 = sadd.s32 4294967294, %s963_s15   ;;  %s963_s15 = sphi %s996_s15, %s1289_s15   ;;  %s959_s14 = sphi %s994_s14, %s1288_s14   ;;  %s955_s13 = sphi %s992_s13, %s1287_s13   ;;  %s951_s12 = sphi %s990_s12, %s1286_s12  }
   0x4   : > { %s1015_s18 = sadd.s32 1, %s963_s15   ;;  %s91_s19 = sadd.s32 1, %s959_s14 }
   0x5   : > { %s88_s20 = ssub.s32 %s963_s15, %s1015_s18  ;;  %p101_p0 = scmp.ne.s32.totalorder %s959_s14, %s955_s13 }
   0x6   : > { %p89_p1 = scmp.eq.s32.totalorder %s88_s20, 0  ;;  %p102_p2 = scmp.eq.s32.totalorder %s1011_s16, 1 }
   0x7   : > { %p107_p3 = scmp.ne.s32.totalorder %s955_s13, %s951_s12  ;;  %p108_p4 = scmp.eq.s32.totalorder %s775_s17, 1 }
   0x8   : > { %s1026_s21 = scalar_select %p89_p1, %s959_s14, %s91_s19  }
   0x9   : > { %p1028_p5 = por %p102_p2, %p101_p0  ;;  %p1032_p6 = por %p108_p4, %p107_p3 }
   0xa   : > { %p778_p7 = scmp.ge.s32.totalorder %s963_s15, 1  ;;  %p141_p8 = scmp.lt.s32.totalorder %s963_s15, 3 }
   0xc   : > { %p142_p9 = pnand %p778_p7, %p141_p8 }
   0xd   : > { %s780_s24 = sshll.u32 (!%p142_p9), %s1011_s16, 4  ;;  %v965_v0 = vmov (!%p142_p9), 0   ;;  %v966_v17 = vmov (!%p142_p9), 1   ;;  %vm332_vm0 = vcmask (!%p142_p9), 523264   ;;  %v1070_v63 = vld [vmem:[%s1281_s1] ss:$0 sm:$0xff] (!%p142_p9) }
   0xe   : > { %145 = sbr.rel (%p142_p9) target bundleno = 302 (0x12e), region = 32  ;;  %834 = vset.pattern.permute.xlu1 (!%p142_p9), %v965_v0  ;;  %833 = vset.pattern.permute.xlu0 (!%p142_p9), %v965_v0  ;;  %p166_p10 = scmp.lt.s32.totalorder (!%p142_p9), %s780_s24, 31 }
   0xf   : > { %s162_s6 = sand.u32 (!%p142_p9), 1, %s955_s13   ;;  %s789_s9 = sshll.u32 (!%p142_p9), %s1011_s16, 11 }
  0x10   : > { %s779_s7 = sshll.u32 (!%p142_p9), %s162_s6, 7  ;;  %s1232_s19 = scalar_lea.hbm (!%p142_p9), %s1283_s3, %s789_s9 }
  0x11   : > { %s1117_s8 = scalar_lea.vmem (!%p142_p9), [#allocation2], %s779_s7  ;;  %s1239_s20 = scalar_lea.sflag (!%p142_p9), [#allocation3], %s162_s6 }
  0x12   : > { %s713_s10 = sshll.u32 (!%p142_p9), %s1117_s8, 4  ;;  %s1234_s10 = int_to_ptr.vmem [resolvable:$true] %s713_s10 }
  0x13   : > { %s901_s16 = scalar_lea.vmem (!%p142_p9), %s1234_s10, 2048 }
  0x14   : > { %p902_p11 = scmp.ne.s32.totalorder (!%p142_p9), %s1234_s10, %s901_s16 }
  0x15   : > { %s1291_s24 = smov (!%p166_p10, %s780_s24), 31 }
  0x16   : > { %s781_s25 = sshll.u32 %s1291_s24, 3  ;;  %p903_p12 = pnand %p902_p11, %p1028_p5 }
  0x17   : > { %s169_s28 = scalar_lea.vmem %s1280_s0, %s781_s25  ;;  %s967_s24 = smov [#allocation2]  }
  0x18   : > { %v174_v1 = vld [vmem:[%s169_s28 + $0x10] sm:$0xff]  ;;  %v172_v2 = vld [vmem:[%s169_s28] sm:$0xff]  ;;  %v175_v3 = vld [vmem:[%s169_s28 + $0x18] sm:$0xff]  ;;  %p904_p13 = pneg %p903_p12  ;;  %s905_s25 = sshll.u32 %s967_s24, 4  ;;  %s906_s25 = int_to_ptr.vmem [resolvable:$false] %s905_s25 }
  0x19   : > { %200 = vperm.xlu1 %834, %v174_v1   ;;  %190 = vperm.xlu0 %833, %v172_v2   ;;  %v173_v4 = vld [vmem:[%s169_s28 + $0x8] sm:$0xff]  ;;  %v176_v6 = vld [vmem:[%s169_s28 + $0x20] sm:$0xff]  ;;  %v179_v7 = vld [vmem:[%s169_s28 + $0x38] sm:$0xff]  ;;  %s907_s26 = scalar_lea.vmem %s906_s25, 4096  ;;  %p908_p0 = scmp.lt.s32.totalorder %s1234_s10, %s906_s25 }
  0x1a   : > { %v177_v5 = vld [vmem:[%s169_s28 + $0x28] sm:$0xff]  ;;  %v178_v8 = vld [vmem:[%s169_s28 + $0x30] sm:$0xff]  ;;  %v180_v10 = vld [vmem:[%s169_s28 + $0x40] sm:$0xff]  ;;  %p909_p1 = scmp.lt.s32.totalorder %s907_s26, %s901_s16 }
  0x1b   : > { %v181_v9 = vld [vmem:[%s169_s28 + $0x48] sm:$0xff]  ;;  %v183_v11 = vld [vmem:[%s169_s28 + $0x58] sm:$0xff]  ;;  %v182_v12 = vld [vmem:[%s169_s28 + $0x50] sm:$0xff] }
  0x1c   : > { %v185_v13 = vld [vmem:[%s169_s28 + $0x68] sm:$0xff]  ;;  %v184_v14 = vld [vmem:[%s169_s28 + $0x60] sm:$0xff]  ;;  %v187_v15 = vld [vmem:[%s169_s28 + $0x78] sm:$0xff]  ;;  %p910_p2 = por %p909_p1, %p908_p0 }
  0x1d   : > { %205 = vperm.xlu1 %834, %v175_v3   ;;  %195 = vperm.xlu0 %833, %v173_v4   ;;  %v186_v16 = vld [vmem:[%s169_s28 + $0x70] sm:$0xff] }
  0x1e   : > { %p911_p3 = pnand %p910_p2, %p904_p13 }
  0x21   : > { %215 = vperm.xlu1 %834, %v177_v5   ;;  %210 = vperm.xlu0 %833, %v176_v6  }
  0x25   : > { %225 = vperm.xlu1 %834, %v179_v7   ;;  %220 = vperm.xlu0 %833, %v178_v8  }
  0x29   : > { %235 = vperm.xlu1 %834, %v181_v9   ;;  %230 = vperm.xlu0 %833, %v180_v10  }
  0x2d   : > { %245 = vperm.xlu1 %834, %v183_v11   ;;  %240 = vperm.xlu0 %833, %v182_v12  }
  0x31   : > { %255 = vperm.xlu1 %834, %v185_v13   ;;  %250 = vperm.xlu0 %833, %v184_v14  }
  0x35   : > { %265 = vperm.xlu1 %834, %v187_v15   ;;  %260 = vperm.xlu0 %833, %v186_v16  }
  0x39   : > { %836 = vset.pattern.permute.xlu1 %v966_v17  ;;  %835 = vset.pattern.permute.xlu0 %v966_v17 }
  0x3a   : > { %273 = vperm.xlu1 %836, %v173_v4   ;;  %269 = vperm.xlu0 %835, %v172_v2  }
  0x3e   : > { %277 = vperm.xlu1 %836, %v174_v1   ;;  %281 = vperm.xlu0 %835, %v175_v3  }
  0x42   : > { %285 = vperm.xlu1 %836, %v176_v6   ;;  %289 = vperm.xlu0 %835, %v177_v5   ;;  %v1076_v6 = vld [vmem:[%s1282_s2] ss:$0 sm:$0xff] }
  0x46   : > { %293 = vperm.xlu1 %836, %v178_v8   ;;  %297 = vperm.xlu0 %835, %v179_v7  }
  0x4a   : > { %301 = vperm.xlu1 %836, %v180_v10   ;;  %305 = vperm.xlu0 %835, %v181_v9  }
  0x4e   : > { %309 = vperm.xlu1 %836, %v182_v12   ;;  %313 = vperm.xlu0 %835, %v183_v11  }
  0x52   : > { %317 = vperm.xlu1 %836, %v184_v14   ;;  %321 = vperm.xlu0 %835, %v185_v13  }
  0x56   : > { %325 = vperm.xlu1 %836, %v186_v16   ;;  %329 = vperm.xlu0 %835, %v187_v15  }
  0x98   : > { %v201_v18 = vpop.permute.xlu1 %200  ;;  %v191_v19 = vpop.permute.xlu0 %190 }
  0x9c   : > { %v206_v20 = vpop.permute.xlu1 %205  ;;  %v196_v21 = vpop.permute.xlu0 %195 }
  0xa0   : > { %v216_v22 = vpop.permute.xlu1 %215  ;;  %v211_v23 = vpop.permute.xlu0 %210 }
  0xa4   : > { %v1042_v24 = vpop.permute.xlu1 %225  ;;  %v1044_v25 = vpop.permute.xlu0 %220 }
  0xa8   : > { %v1046_v26 = vpop.permute.xlu1 %235  ;;  %v1048_v27 = vpop.permute.xlu0 %230 }
  0xac   : > { %v1050_v28 = vpop.permute.xlu1 %245  ;;  %v1052_v29 = vpop.permute.xlu0 %240 }
  0xb0   : > { %v1054_v30 = vpop.permute.xlu1 %255  ;;  %v1056_v31 = vpop.permute.xlu0 %250 }
  0xb4   : > { %v1058_v32 = vpop.permute.xlu1 %265  ;;  %v1060_v33 = vpop.permute.xlu0 %260 }
  0xb9   : > { %v274_v34 = vpop.permute.xlu1 %273  ;;  %v270_v35 = vpop.permute.xlu0 %269 }
  0xba   : > { %v334_v36 = vsel %vm332_vm0, %v196_v21, %v274_v34  ;;  %v333_v37 = vsel %vm332_vm0, %v191_v19, %v270_v35 }
  0xbb   : > { %v350_v38 = vmul.f32 0.1, %v334_v36  ;;  %v512_v39 = vsub.f32 0.0, %v334_v36  ;;  %v349_v40 = vmul.f32 0.1, %v333_v37  ;;  %v511_v41 = vsub.f32 0.0, %v333_v37 }
  0xbd   : > { %v398_v42 = vmul.f32 6.0, %v350_v38  ;;  %v529_v43 = vmul.f32 1.442695, %v512_v39  ;;  %v278_v44 = vpop.permute.xlu1 %277  ;;  %v282_v45 = vpop.permute.xlu0 %281  ;;  %v397_v46 = vmul.f32 6.0, %v349_v40  ;;  %v527_v47 = vmul.f32 1.442695, %v511_v41 }
  0xbe   : > { %v335_v48 = vsel %vm332_vm0, %v201_v18, %v278_v44  ;;  %v336_v49 = vsel %vm332_vm0, %v206_v20, %v282_v45  ;;  %v366_v0 = vmul.f32 %v350_v38, %v350_v38  ;;  %v365_v4 = vmul.f32 %v349_v40, %v349_v40 }
  0xbf   : > { %837 = vpow2.f32 %v529_v43  ;;  %v513_v50 = vsub.f32 0.0, %v335_v48  ;;  %v414_v51 = vsub.f32 15.0, %v398_v42  ;;  %v514_v52 = vsub.f32 0.0, %v336_v49 }
  0xc0   : > { %839 = vpow2.f32 %v527_v47  ;;  %v413_v53 = vsub.f32 15.0, %v397_v46  ;;  %v351_v55 = vmul.f32 0.1, %v335_v48  ;;  %v352_v60 = vmul.f32 0.1, %v336_v49 }
  0xc1   : > { %v531_v54 = vmul.f32 1.442695, %v513_v50  ;;  %v533_v56 = vmul.f32 1.442695, %v514_v52  ;;  %v286_v57 = vpop.permute.xlu1 %285  ;;  %v290_v58 = vpop.permute.xlu0 %289  ;;  %v430_v59 = vmul.f32 %v414_v51, %v350_v38  ;;  %v382_v15 = vmul.f32 %v366_v0, %v350_v38 }
  0xc2   : > { %v429_v61 = vmul.f32 %v413_v53, %v349_v40  ;;  %v337_v62 = vsel %vm332_vm0, %v211_v23, %v286_v57  ;;  %v399_v1 = vmul.f32 6.0, %v351_v55  ;;  %v338_v3 = vsel %vm332_vm0, %v216_v22, %v290_v58 }
  0xc3   : > { %841 = vpow2.f32 %v531_v54  ;;  %v515_v2 = vsub.f32 0.0, %v337_v62  ;;  %v446_v7 = vsub.f32 10.0, %v430_v59  ;;  %v367_v8 = vmul.f32 %v351_v55, %v351_v55 }
  0xc4   : > { %843 = vpow2.f32 %v533_v56  ;;  %v400_v9 = vmul.f32 6.0, %v352_v60  ;;  %v445_v12 = vsub.f32 10.0, %v429_v61  ;;  %v516_v14 = vsub.f32 0.0, %v338_v3 }
  0xc5   : > { %v535_v13 = vmul.f32 1.442695, %v515_v2  ;;  %v415_v17 = vsub.f32 15.0, %v399_v1  ;;  %v381_v19 = vmul.f32 %v365_v4, %v349_v40  ;;  %v1081_v20 = vmul.f32 0.1, %v337_v62  ;;  %v294_v38 = vpop.permute.xlu1 %293  ;;  %v298_v2 = vpop.permute.xlu0 %297 }
  0xc6   : > { %v383_v22 = vmul.f32 %v367_v8, %v351_v55  ;;  %v368_v23 = vmul.f32 %v352_v60, %v352_v60  ;;  %v416_v34 = vsub.f32 15.0, %v400_v9  ;;  %v462_v36 = vmul.f32 %v446_v7, %v382_v15 }
  0xc7   : > { %845 = vpow2.f32 %v535_v13  ;;  %v461_v39 = vmul.f32 %v445_v12, %v381_v19  ;;  %v537_v41 = vmul.f32 1.442695, %v516_v14  ;;  %v431_v44 = vmul.f32 %v415_v17, %v351_v55 }
  0xc8   : > { %v1085_v40 = vmul.f32 0.1, %v338_v3  ;;  %v401_v48 = vmul.f32 6.0, %v1081_v20  ;;  %v432_v51 = vmul.f32 %v416_v34, %v352_v60  ;;  %v339_v52 = vsel %vm332_vm0, %v1044_v25, %v294_v38 }
  0xc9   : > { %v838_v5 = vpop.eup %837  ;;  %847 = vpow2.f32 %v537_v41  ;;  %v478_v53 = vsub.f32 1.0, %v462_v36  ;;  %v384_v55 = vmul.f32 %v368_v23, %v352_v60  ;;  %v447_v58 = vsub.f32 10.0, %v431_v44 }
  0xca   : > { %v840_v10 = vpop.eup %839  ;;  %v566_v11 = vsub.f32 %v838_v5, %v1070_v63  ;;  %v517_v61 = vsub.f32 0.0, %v339_v52  ;;  %v417_v0 = vsub.f32 15.0, %v401_v48  ;;  %v402_v1 = vmul.f32 6.0, %v1085_v40 }
  0xcb   : > { %v565_v16 = vsub.f32 %v840_v10, %v1070_v63  ;;  %v477_v3 = vsub.f32 1.0, %v461_v39  ;;  %v448_v25 = vsub.f32 10.0, %v432_v51  ;;  %v369_v60 = vmul.f32 %v1081_v20, %v1081_v20 }
  0xcc   : > { %v588_v18 = vmul.f32 %v1076_v6, %v566_v11  ;;  %v1096_v8 = vmul.f32 0.1, %v339_v52  ;;  %v539_v9 = vmul.f32 1.442695, %v517_v61  ;;  %v463_v10 = vmul.f32 %v447_v58, %v383_v22 }
  0xcd   : > { %v587_v21 = vmul.f32 %v1076_v6, %v565_v16  ;;  %v842_v35 = vpop.eup %841  ;;  %v340_v13 = vsel %vm332_vm0, %v1042_v24, %v298_v2  ;;  %v433_v15 = vmul.f32 %v417_v0, %v1081_v20  ;;  %v494_v17 = vmax.f32 %v478_v53, 0.0 }
  0xce   : > { %v604_v37 = vsub.f32 0.0, %v588_v18  ;;  %v844_v42 = vpop.eup %843  ;;  %v567_v45 = vsub.f32 %v842_v35, %v1070_v63  ;;  %v518_v19 = vsub.f32 0.0, %v340_v13  ;;  %v493_v23 = vmax.f32 %v477_v3, 0.0 }
  0xcf   : > { %v603_v43 = vsub.f32 0.0, %v587_v21  ;;  %v568_v47 = vsub.f32 %v844_v42, %v1070_v63  ;;  %v302_v21 = vpop.permute.xlu1 %301  ;;  %v464_v34 = vmul.f32 %v448_v25, %v384_v55  ;;  %v403_v35 = vmul.f32 6.0, %v1096_v8  ;;  %v306_v55 = vpop.permute.xlu0 %305 }
  0xd0   : > { %v620_v46 = vmul.f32 %v604_v37, %v566_v11  ;;  %v589_v50 = vmul.f32 %v1076_v6, %v567_v45  ;;  %v385_v24 = vmul.f32 %v369_v60, %v1081_v20  ;;  %v541_v39 = vmul.f32 1.442695, %v518_v19 }
  0xd1   : > { %v619_v49 = vmul.f32 %v603_v43, %v565_v16  ;;  %v590_v56 = vmul.f32 %v1076_v6, %v568_v47  ;;  %v846_v5 = vpop.eup %845  ;;  %v418_v16 = vsub.f32 15.0, %v402_v1  ;;  %v479_v41 = vsub.f32 1.0, %v463_v10 }
  0xd2   : > { %v637_v54 = vmul.f32 1.442695, %v620_v46  ;;  %v605_v59 = vsub.f32 0.0, %v589_v50  ;;  %v569_v12 = vsub.f32 %v846_v5, %v1070_v63  ;;  %v449_v38 = vsub.f32 10.0, %v433_v15 }
  0xd3   : > { %v635_v57 = vmul.f32 1.442695, %v619_v49  ;;  %v606_v62 = vsub.f32 0.0, %v590_v56  ;;  %v848_v22 = vpop.eup %847  ;;  %v434_v42 = vmul.f32 %v418_v16, %v1085_v40  ;;  %v341_v43 = vsel %vm332_vm0, %v1048_v27, %v302_v21 }
  0xd4   : > { %849 = vpow2.f32 %v637_v54  ;;  %v621_v4 = vmul.f32 %v605_v59, %v567_v45  ;;  %v591_v18 = vmul.f32 %v1076_v6, %v569_v12  ;;  %v570_v37 = vsub.f32 %v848_v22, %v1070_v63 }
  0xd5   : > { %851 = vpow2.f32 %v635_v57  ;;  %v622_v7 = vmul.f32 %v606_v62, %v568_v47  ;;  %v1113_v46 = vmul.f32 0.1, %v340_v13  ;;  %v480_v48 = vsub.f32 1.0, %v464_v34 }
  0xd6   : > { %v639_v11 = vmul.f32 1.442695, %v621_v4  ;;  %853 = vpow2.f32 %v539_v9  ;;  %v607_v36 = vsub.f32 0.0, %v591_v18  ;;  %v592_v45 = vmul.f32 %v1076_v6, %v570_v37  ;;  %v310_v9 = vpop.permute.xlu1 %309 }
  0xd7   : > { %v641_v14 = vmul.f32 1.442695, %v622_v7  ;;  %v370_v20 = vmul.f32 %v1085_v40, %v1085_v40  ;;  %v419_v49 = vsub.f32 15.0, %v403_v35  ;;  %v519_v50 = vsub.f32 0.0, %v341_v43 }
  0xd8   : > { %855 = vpow2.f32 %v639_v11  ;;  %v623_v44 = vmul.f32 %v607_v36, %v569_v12  ;;  %v608_v54 = vsub.f32 0.0, %v592_v45  ;;  %v495_v27 = vmax.f32 %v479_v41, 0.0 }
  0xd9   : > { %857 = vpow2.f32 %v641_v14  ;;  %v465_v57 = vmul.f32 %v449_v38, %v385_v24  ;;  %v450_v58 = vsub.f32 10.0, %v434_v42  ;;  %v404_v61 = vmul.f32 6.0, %v1113_v46 }
  0xda   : > { %859 = vpow2.f32 %v541_v39  ;;  %v643_v53 = vmul.f32 1.442695, %v623_v44  ;;  %v624_v59 = vmul.f32 %v608_v54, %v570_v37  ;;  %v543_v62 = vmul.f32 1.442695, %v519_v50  ;;  %v314_v39 = vpop.permute.xlu0 %313 }
  0xdb   : > { %v496_v1 = vmax.f32 %v480_v48, 0.0  ;;  %v386_v2 = vmul.f32 %v370_v20, %v1085_v40  ;;  %v435_v3 = vmul.f32 %v419_v49, %v1096_v8  ;;  %v342_v4 = vsel %vm332_vm0, %v1046_v26, %v306_v55 }
  0xdc   : > { %861 = vpow2.f32 %v643_v53  ;;  %v645_v5 = vmul.f32 1.442695, %v624_v59  ;;  %v1127_v60 = vmul.f32 0.1, %v341_v43  ;;  %v481_v12 = vsub.f32 1.0, %v465_v57 }
  0xdd   : > { %863 = vpow2.f32 %v543_v62  ;;  %v466_v13 = vmul.f32 %v450_v58, %v386_v2  ;;  %v371_v40 = vmul.f32 %v1096_v8, %v1096_v8  ;;  %v420_v15 = vsub.f32 15.0, %v404_v61 }
  0xde   : > { %v850_v47 = vpop.eup %849  ;;  %865 = vpow2.f32 %v645_v5  ;;  %v451_v16 = vsub.f32 10.0, %v435_v3  ;;  %v343_v18 = vsel %vm332_vm0, %v1052_v29, %v310_v9  ;;  %v405_v22 = vmul.f32 6.0, %v1127_v60 }
  0xdf   : > { %v852_v51 = vpop.eup %851  ;;  %v668_v52 = vmul.f32 %v850_v47, %v494_v17  ;;  %v520_v17 = vsub.f32 0.0, %v342_v4  ;;  %v521_v34 = vsub.f32 0.0, %v343_v18  ;;  %v497_v35 = vmax.f32 %v481_v12, 0.0 }
  0xe0   : > { %v667_v56 = vmul.f32 %v852_v51, %v493_v23  ;;  %v854_v0 = vpop.eup %853  ;;  %v1137_v23 = vmul.f32 0.1, %v342_v4  ;;  %v387_v24 = vmul.f32 %v371_v40, %v1096_v8  ;;  %v482_v41 = vsub.f32 1.0, %v466_v13 }
  0xe1   : > { %684 = vst [vmem:[%s1117_s8 + $0x8] sm:$0xff] %v668_v52  ;;  %v571_v7 = vsub.f32 %v854_v0, %v1070_v63  ;;  %v545_v37 = vmul.f32 1.442695, %v520_v17  ;;  %v372_v29 = vmul.f32 %v1113_v46, %v1113_v46  ;;  %v436_v42 = vmul.f32 %v420_v15, %v1113_v46  ;;  %v318_v52 = vpop.permute.xlu1 %317 }
  0xe2   : > { %683 = vst [vmem:[%s1117_s8] sm:$0xff] %v667_v56  ;;  %v856_v25 = vpop.eup %855  ;;  %v467_v43 = vmul.f32 %v451_v16, %v387_v24  ;;  %v547_v45 = vmul.f32 1.442695, %v521_v34  ;;  %v421_v8 = vsub.f32 15.0, %v405_v22  ;;  %v406_v20 = vmul.f32 6.0, %v1137_v23 }
  0xe3   : > { %v858_v10 = vpop.eup %857  ;;  %v669_v11 = vmul.f32 %v856_v25, %v495_v27  ;;  %v593_v26 = vmul.f32 %v1076_v6, %v571_v7  ;;  %867 = vpow2.f32 %v545_v37  ;;  %v344_v49 = vsel %vm332_vm0, %v1050_v28, %v314_v39 }
  0xe4   : > { %v670_v14 = vmul.f32 %v858_v10, %v496_v1  ;;  %v860_v19 = vpop.eup %859  ;;  %869 = vpow2.f32 %v547_v45  ;;  %v498_v54 = vmax.f32 %v482_v41, 0.0  ;;  %v388_v55 = vmul.f32 %v372_v29, %v1113_v46 }
  0xe5   : > { %685 = vst [vmem:[%s1117_s8 + $0x10] sm:$0xff] %v669_v11  ;;  %v609_v21 = vsub.f32 0.0, %v593_v26  ;;  %v572_v36 = vsub.f32 %v860_v19, %v1070_v63  ;;  %v452_v56 = vsub.f32 10.0, %v436_v42  ;;  %v1151_v58 = vmul.f32 0.1, %v343_v18  ;;  %v322_v26 = vpop.permute.xlu0 %321  ;;  %v326_v39 = vpop.permute.xlu1 %325 }
  0xe6   : > { %686 = vst [vmem:[%s1117_s8 + $0x18] sm:$0xff] %v670_v14  ;;  %v862_v47 = vpop.eup %861  ;;  %v522_v59 = vsub.f32 0.0, %v344_v49  ;;  %v483_v28 = vsub.f32 1.0, %v467_v43  ;;  %v437_v62 = vmul.f32 %v421_v8, %v1127_v60  ;;  %v422_v0 = vsub.f32 15.0, %v406_v20 }
  0xe7   : > { %v625_v38 = vmul.f32 %v609_v21, %v571_v7  ;;  %v594_v44 = vmul.f32 %v1076_v6, %v572_v36  ;;  %v671_v50 = vmul.f32 %v862_v47, %v497_v35  ;;  %v864_v53 = vpop.eup %863  ;;  %v345_v1 = vsel %vm332_vm0, %v1056_v31, %v318_v52 }
  0xe8   : > { %v573_v57 = vsub.f32 %v864_v53, %v1070_v63  ;;  %v866_v61 = vpop.eup %865  ;;  %v549_v4 = vmul.f32 1.442695, %v522_v59  ;;  %v468_v25 = vmul.f32 %v452_v56, %v388_v55  ;;  %v373_v5 = vmul.f32 %v1127_v60, %v1127_v60 }
  0xe9   : > { %v647_v48 = vmul.f32 1.442695, %v625_v38  ;;  %v610_v51 = vsub.f32 0.0, %v594_v44  ;;  %687 = vst [vmem:[%s1117_s8 + $0x20] sm:$0xff] %v671_v50  ;;  %v672_v2 = vmul.f32 %v866_v61, %v498_v54  ;;  %v407_v9 = vmul.f32 6.0, %v1151_v58  ;;  %v330_v56 = vpop.permute.xlu0 %329 }
  0xea   : > { %v595_v46 = vmul.f32 %v1076_v6, %v573_v57  ;;  %v523_v10 = vsub.f32 0.0, %v345_v1  ;;  %v453_v11 = vsub.f32 10.0, %v437_v62  ;;  %v499_v13 = vmax.f32 %v483_v28, 0.0 }
  0xeb   : > { %871 = vpow2.f32 %v647_v48  ;;  %v626_v27 = vmul.f32 %v610_v51, %v572_v36  ;;  %688 = vst [vmem:[%s1117_s8 + $0x28] sm:$0xff] %v672_v2  ;;  %v438_v40 = vmul.f32 %v422_v0, %v1137_v23  ;;  %v389_v15 = vmul.f32 %v373_v5, %v1127_v60 }
  0xec   : > { %v611_v7 = vsub.f32 0.0, %v595_v46  ;;  %v551_v14 = vmul.f32 1.442695, %v523_v10  ;;  %v374_v16 = vmul.f32 %v1137_v23, %v1137_v23  ;;  %v1166_v18 = vmul.f32 0.1, %v344_v49 }
  0xed   : > { %v649_v3 = vmul.f32 1.442695, %v626_v27  ;;  %v868_v12 = vpop.eup %867  ;;  %v484_v21 = vsub.f32 1.0, %v468_v25  ;;  %v423_v34 = vsub.f32 15.0, %v407_v9  ;;  %v469_v24 = vmul.f32 %v453_v11, %v389_v15 }
  0xee   : > { %v627_v31 = vmul.f32 %v611_v7, %v573_v57  ;;  %v574_v17 = vsub.f32 %v868_v12, %v1070_v63  ;;  %v870_v19 = vpop.eup %869  ;;  %v346_v60 = vsel %vm332_vm0, %v1054_v30, %v322_v26  ;;  %v454_v38 = vsub.f32 10.0, %v438_v40 }
  0xef   : > { %873 = vpow2.f32 %v649_v3  ;;  %v575_v37 = vsub.f32 %v870_v19, %v1070_v63  ;;  %v1172_v29 = vmul.f32 0.1, %v345_v1  ;;  %v390_v42 = vmul.f32 %v374_v16, %v1137_v23 }
  0xf0   : > { %875 = vpow2.f32 %v549_v4  ;;  %v651_v22 = vmul.f32 1.442695, %v627_v31  ;;  %v596_v36 = vmul.f32 %v1076_v6, %v574_v17  ;;  %v408_v45 = vmul.f32 6.0, %v1166_v18 }
  0xf1   : > { %877 = vpow2.f32 %v551_v14  ;;  %v597_v44 = vmul.f32 %v1076_v6, %v575_v37  ;;  %v375_v47 = vmul.f32 %v1151_v58, %v1151_v58  ;;  %v439_v48 = vmul.f32 %v423_v34, %v1151_v58 }
  0xf2   : > { %879 = vpow2.f32 %v651_v22  ;;  %v612_v43 = vsub.f32 0.0, %v596_v36  ;;  %v524_v30 = vsub.f32 0.0, %v346_v60  ;;  %v347_v8 = vsel %vm332_vm0, %v1060_v33, %v326_v39 }
  0xf3   : > { %v500_v20 = vmax.f32 %v484_v21, 0.0  ;;  %v485_v49 = vsub.f32 1.0, %v469_v24  ;;  %v613_v51 = vsub.f32 0.0, %v597_v44  ;;  %v470_v52 = vmul.f32 %v454_v38, %v390_v42 }
  0xf4   : > { %v628_v50 = vmul.f32 %v612_v43, %v574_v17  ;;  %v409_v53 = vmul.f32 6.0, %v1172_v29  ;;  %v553_v54 = vmul.f32 1.442695, %v524_v30  ;;  %v525_v55 = vsub.f32 0.0, %v347_v8 }
  0xf5   : > { %v872_v35 = vpop.eup %871  ;;  %v629_v61 = vmul.f32 %v613_v51, %v575_v37  ;;  %v424_v28 = vsub.f32 15.0, %v408_v45  ;;  %v391_v62 = vmul.f32 %v375_v47, %v1151_v58  ;;  %v455_v33 = vsub.f32 10.0, %v439_v48 }
  0xf6   : > { %v673_v41 = vmul.f32 %v872_v35, %v499_v13  ;;  %v653_v59 = vmul.f32 1.442695, %v628_v50  ;;  %881 = vpow2.f32 %v553_v54  ;;  %v1187_v2 = vmul.f32 0.1, %v346_v60 }
  0xf7   : > { %v655_v1 = vmul.f32 1.442695, %v629_v61  ;;  %v348_v3 = vsel %vm332_vm0, %v1058_v32, %v330_v56  ;;  %v501_v4 = vmax.f32 %v485_v49, 0.0  ;;  %v425_v5 = vsub.f32 15.0, %v409_v53 }
  0xf8   : > { %689 = vst [vmem:[%s1117_s8 + $0x30] sm:$0xff] %v673_v41  ;;  %883 = vpow2.f32 %v653_v59  ;;  %v555_v7 = vmul.f32 1.442695, %v525_v55  ;;  %v486_v9 = vsub.f32 1.0, %v470_v52  ;;  %v440_v58 = vmul.f32 %v424_v28, %v1166_v18 }
  0xf9   : > { %v874_v23 = vpop.eup %873  ;;  %885 = vpow2.f32 %v655_v1  ;;  %v471_v12 = vmul.f32 %v455_v33, %v391_v62  ;;  %v526_v31 = vsub.f32 0.0, %v348_v3  ;;  %v376_v32 = vmul.f32 %v1166_v18, %v1166_v18 }
  0xfa   : > { %v876_v27 = vpop.eup %875  ;;  %v674_v57 = vmul.f32 %v874_v23, %v500_v20  ;;  %887 = vpow2.f32 %v555_v7  ;;  %v410_v26 = vmul.f32 6.0, %v1187_v2  ;;  %v441_v16 = vmul.f32 %v425_v5, %v1172_v29 }
  0xfb   : > { %v576_v0 = vsub.f32 %v876_v27, %v1070_v63  ;;  %v878_v46 = vpop.eup %877  ;;  %v1199_v17 = vmul.f32 0.1, %v347_v8  ;;  %v557_v19 = vmul.f32 1.442695, %v526_v31  ;;  %v456_v21 = vsub.f32 10.0, %v440_v58 }
  0xfc   : > { %690 = vst [vmem:[%s1117_s8 + $0x38] sm:$0xff] %v674_v57  ;;  %v577_v10 = vsub.f32 %v878_v46, %v1070_v63  ;;  %v880_v11 = vpop.eup %879  ;;  %v487_v34 = vsub.f32 1.0, %v471_v12  ;;  %v377_v24 = vmul.f32 %v1172_v29, %v1172_v29  ;;  %v502_v36 = vmax.f32 %v486_v9, 0.0 }
  0xfd   : > { %v598_v25 = vmul.f32 %v1076_v6, %v576_v0  ;;  %v675_v40 = vmul.f32 %v880_v11, %v501_v4  ;;  %889 = vpow2.f32 %v557_v19  ;;  %v392_v37 = vmul.f32 %v376_v32, %v1166_v18 }
  0xfe   : > { %v599_v14 = vmul.f32 %v1076_v6, %v577_v10  ;;  %v426_v39 = vsub.f32 15.0, %v410_v26  ;;  %v457_v38 = vsub.f32 10.0, %v441_v16  ;;  %v411_v42 = vmul.f32 6.0, %v1199_v17 }
  0xff   : > { %v614_v13 = vsub.f32 0.0, %v598_v25  ;;  %691 = vst [vmem:[%s1117_s8 + $0x40] sm:$0xff] %v675_v40  ;;  %v364_v43 = vmul.f32 0.1, %v348_v3  ;;  %v472_v45 = vmul.f32 %v456_v21, %v392_v37  ;;  %v503_v8 = vmax.f32 %v487_v34, 0.0 }
 0x100   : > { %v615_v22 = vsub.f32 0.0, %v599_v14  ;;  %v882_v41 = vpop.eup %881  ;;  %v393_v20 = vmul.f32 %v377_v24, %v1172_v29  ;;  %v442_v49 = vmul.f32 %v426_v39, %v1187_v2  ;;  %v427_v53 = vsub.f32 15.0, %v411_v42 }
 0x101   : > { %v630_v15 = vmul.f32 %v614_v13, %v576_v0  ;;  %v578_v48 = vsub.f32 %v882_v41, %v1070_v63  ;;  %v412_v54 = vmul.f32 6.0, %v364_v43  ;;  %v488_v55 = vsub.f32 1.0, %v472_v45 }
 0x102   : > { %v631_v60 = vmul.f32 %v615_v22, %v577_v10  ;;  %v884_v44 = vpop.eup %883  ;;  %v473_v52 = vmul.f32 %v457_v38, %v393_v20  ;;  %v378_v29 = vmul.f32 %v1187_v2, %v1187_v2  ;;  %v458_v62 = vsub.f32 10.0, %v442_v49 }
 0x103   : > { %v657_v35 = vmul.f32 1.442695, %v630_v15  ;;  %v676_v30 = vmul.f32 %v884_v44, %v502_v36  ;;  %v886_v18 = vpop.eup %885  ;;  %v600_v50 = vmul.f32 %v1076_v6, %v578_v48  ;;  %v443_v33 = vmul.f32 %v427_v53, %v1199_v17 }
 0x104   : > { %v659_v47 = vmul.f32 1.442695, %v631_v60  ;;  %v888_v51 = vpop.eup %887  ;;  %v677_v23 = vmul.f32 %v886_v18, %v503_v8  ;;  %v489_v28 = vsub.f32 1.0, %v473_v52  ;;  %v428_v0 = vsub.f32 15.0, %v412_v54 }
 0x105   : > { %891 = vpow2.f32 %v657_v35  ;;  %692 = vst [vmem:[%s1117_s8 + $0x48] sm:$0xff] %v676_v30  ;;  %v616_v56 = vsub.f32 0.0, %v600_v50  ;;  %v579_v27 = vsub.f32 %v888_v51, %v1070_v63  ;;  %v504_v1 = vmax.f32 %v488_v55, 0.0 }
 0x106   : > { %893 = vpow2.f32 %v659_v47  ;;  %693 = vst [vmem:[%s1117_s8 + $0x50] sm:$0xff] %v677_v23  ;;  %v394_v5 = vmul.f32 %v378_v29, %v1187_v2  ;;  %v379_v7 = vmul.f32 %v1199_v17, %v1199_v17  ;;  %v505_v11 = vmax.f32 %v489_v28, 0.0 }
 0x107   : > { %v632_v57 = vmul.f32 %v616_v56, %v578_v48  ;;  %v601_v59 = vmul.f32 %v1076_v6, %v579_v27  ;;  %v890_v61 = vpop.eup %889  ;;  %v459_v13 = vsub.f32 10.0, %v443_v33  ;;  %v444_v31 = vmul.f32 %v428_v0, %v364_v43 }
 0x108   : > { %v580_v4 = vsub.f32 %v890_v61, %v1070_v63  ;;  %v474_v12 = vmul.f32 %v458_v62, %v394_v5  ;;  %v395_v2 = vmul.f32 %v379_v7, %v1199_v17  ;;  %v380_v26 = vmul.f32 %v364_v43, %v364_v43 }
 0x109   : > { %v661_v3 = vmul.f32 1.442695, %v632_v57  ;;  %v617_v46 = vsub.f32 0.0, %v601_v59 }
 0x10a   : > { %v602_v10 = vmul.f32 %v1076_v6, %v580_v4  ;;  %v490_v16 = vsub.f32 1.0, %v474_v12  ;;  %v475_v19 = vmul.f32 %v459_v13, %v395_v2  ;;  %v460_v6 = vsub.f32 10.0, %v444_v31 }
 0x10b   : > { %895 = vpow2.f32 %v661_v3  ;;  %v633_v58 = vmul.f32 %v617_v46, %v579_v27  ;;  %v396_v22 = vmul.f32 %v380_v26, %v364_v43 }
 0x10c   : > { %v618_v63 = vsub.f32 0.0, %v602_v10  ;;  %v506_v34 = vmax.f32 %v490_v16, 0.0  ;;  %v491_v35 = vsub.f32 1.0, %v475_v19 }
 0x10d   : > { %v663_v32 = vmul.f32 1.442695, %v633_v58  ;;  %v476_v24 = vmul.f32 %v460_v6, %v396_v22 }
 0x10e   : > { %v634_v15 = vmul.f32 %v618_v63, %v580_v4  ;;  %v507_v37 = vmax.f32 %v491_v35, 0.0 }
 0x10f   : > { %v892_v25 = vpop.eup %891  ;;  %897 = vpow2.f32 %v663_v32  ;;  %v492_v60 = vsub.f32 1.0, %v476_v24 }
 0x110   : > { %v678_v9 = vmul.f32 %v892_v25, %v504_v1  ;;  %v894_v40 = vpop.eup %893  ;;  %v665_v21 = vmul.f32 1.442695, %v634_v15 }
 0x111   : > { %v679_v14 = vmul.f32 %v894_v40, %v505_v11  ;;  %v508_v38 = vmax.f32 %v492_v60, 0.0 }
 0x112   : > { %694 = vst [vmem:[%s1117_s8 + $0x58] sm:$0xff] %v678_v9  ;;  %899 = vpow2.f32 %v665_v21 }
 0x113   : > { %695 = vst [vmem:[%s1117_s8 + $0x60] sm:$0xff] %v679_v14 }
 0x115   : > { %v896_v36 = vpop.eup %895 }
 0x116   : > { %v680_v17 = vmul.f32 %v896_v36, %v506_v34 }
 0x118   : > { %696 = vst [vmem:[%s1117_s8 + $0x68] sm:$0xff] %v680_v17 }
 0x119   : > { %v898_v39 = vpop.eup %897 }
 0x11a   : > { %v681_v41 = vmul.f32 %v898_v39, %v507_v37 }
 0x11c   : > { %697 = vst [vmem:[%s1117_s8 + $0x70] sm:$0xff] %v681_v41  ;;  %v900_v42 = vpop.eup %899 }
 0x11d   : > { %v682_v43 = vmul.f32 %v900_v42, %v508_v38 }
 0x11f   : > { %698 = vst [vmem:[%s1117_s8 + $0x78] sm:$0xff] %v682_v43 }
 0x120   : > { %914 = shalt.err (!%p911_p3)
}
 0x121   : > { %s915_s27 = scalar_lea.hbm %s1232_s19, 2048  ;;  %s919_s30 = scalar_lea.hbm %s1283_s3, 4096 }
 0x122   : > { %p916_p4 = scmp.ne.s32.totalorder %s1232_s19, %s915_s27  ;;  %p920_p9 = scmp.lt.u32.totalorder %s1232_s19, %s1283_s3 }
 0x123   : > { %p921_p10 = scmp.lt.u32.totalorder %s919_s30, %s915_s27  ;;  %p923_p12 = scmp.lt.u32.totalorder %s915_s27, %s1232_s19 }
 0x124   : > { %p917_p7 = pnand %p916_p4, %p1028_p5 }
 0x125   : > { %p922_p11 = por %p921_p10, %p920_p9 }
 0x126   : > { %p918_p8 = pneg %p917_p7 }
 0x127   : > { %p924_p13 = por %p923_p12, %p922_p11 }
 0x129   : > { %p925_p0 = pnand %p924_p13, %p918_p8 }
 0x12b   : > { %928 = shalt.err (!%p925_p0)
}
 0x12c   : > { %s968_s6 = smov 128   ;;  %s969_s7 = smov 8  }
 0x12d   : > { %790 = dma.vmem_to_hbm [thread:$0]  (%p1028_p5), %s1234_s10, 2048, %s1232_s19, %s1239_s20, %s968_s6, %s968_s6, %s969_s7  }
 0x12e PF: > { %p796_p1 = scmp.ge.s32.totalorder %s963_s15, 2  ;;  %s728_s8 = sand.u32 1, %s951_s12  }
 0x12f   : > { %s729_s9 = scalar_lea.sflag [#allocation3], %s728_s8 }
 0x130   : > { %p793_p2 = pnand %p796_p1, %p1032_p6 }
 0x132   : > { %946 = dma.done.wait (!%p793_p2), %s729_s9, 2048  }
 0x133   : > { %948 = vsyncadd (!%p793_p2), %s729_s9, 4294965248  ;;  %p13_p3 = scmp.ge.s32.totalorder %s1015_s18, 4   ;;  %s1286_s12 = smov %s955_s13 }
 0x134   : > { %s1287_s13 = smov %s959_s14  ;;  %s1288_s14 = smov %s1026_s21 }
 0x135   : > { %s1289_s15 = smov %s1015_s18  ;;  %15 = sbr.rel (!%p13_p3) target bundleno = 3 (0x3), region = 67 }
 0x13c   :  { %734 = vsyncpa [#allocation3], 1 }
 0x13d   :  { %736 = vsyncpa [#allocation3 + $0x1], 1 }

</bundles_post_ra>
